<compile_context>
chip_gen: v5e
topology: v5e:2x2
jax: 0.10.0
libtpu: 0.0.40
codegen_flags: <defaults>
</compile_context>

<pallas_src>
import jax
import jax.numpy as jnp
from jax import lax
from jax.experimental import pallas as pl
from jax.experimental.pallas import tpu as pltpu


def _make_sigmoid_loss_kernel(N, TN, acc_lanes, has_mask):
    inv_n = 1.0 / float(N)
    n_chunks = TN // acc_lanes

    def kernel(x_ref, y_ref, *rest):
        if has_mask:
            w_ref, o_ref, acc_ref = rest
        else:
            o_ref, acc_ref = rest
        k = pl.program_id(1)

        @pl.when(k == 0)
        def _init():
            acc_ref[...] = jnp.zeros_like(acc_ref)

        x = x_ref[...].astype(jnp.float32)
        y = y_ref[...].astype(jnp.float32)
        # Numerically-stable BCE-with-logits (same formula PyTorch uses):
        #   loss = max(x, 0) - x*y + log1p(exp(-|x|))
        loss = jnp.maximum(x, 0.0) - x * y + jnp.log1p(jnp.exp(-jnp.abs(x)))
        if has_mask:
            loss = loss * w_ref[...].astype(jnp.float32)

        if N % TN != 0:
            # Ragged last N-tile: zero out padded columns so they don't leak into the mean.
            col = k * TN + lax.broadcasted_iota(jnp.int32, loss.shape, 1)
            loss = jnp.where(col < N, loss, 0.0)

        # Per-lane partial sum: elementwise VPU adds of lane-aligned 128-wide slices.
        partial = loss[:, :acc_lanes]
        for g in range(1, n_chunks):
            partial = partial + loss[:, g * acc_lanes:(g + 1) * acc_lanes]
        acc_ref[...] += partial

        @pl.when(k == pl.num_programs(1) - 1)
        def _finalize():
            # Single cross-lane (XLU) reduce per kernel, then mean over dim=1.
            row_sum = jnp.sum(acc_ref[...], axis=1, keepdims=True)
            o_ref[...] = (row_sum * jnp.float32(inv_n)).astype(o_ref.dtype)

    return kernel


def sigmoid_loss(inputs, target, mask=None, *, tb=256, tn=1024):
    """Pallas equivalent of SigmoidLoss.forward.

    inputs, target: (B, N) arrays (logits and 0/1 targets); bf16 inputs are fine.
    mask: optional (B, N) per-element weights. Returns (B,) float32.
    """
    B, N = inputs.shape
    assert target.shape == (B, N)
    has_mask = mask is not None
    if has_mask:
        assert mask.shape == (B, N)

    # Tile sizes: clamp to the array extents (a block equal to the full dim is always legal);
    # otherwise keep TB a multiple of 8 and TN a multiple of 128.
    TB = B if B <= tb else tb
    TN = N if N <= tn else tn
    nb = pl.cdiv(B, TB)
    nn = pl.cdiv(N, TN)
    acc_lanes = 128 if TN % 128 == 0 else TN

    kernel = _make_sigmoid_loss_kernel(N, TN, acc_lanes, has_mask)

    tile_spec = pl.BlockSpec((TB, TN), lambda i, k: (i, k))
    in_specs = [tile_spec, tile_spec] + ([tile_spec] if has_mask else [])
    args = (inputs, target) + ((mask,) if has_mask else ())

    out = pl.pallas_call(
        kernel,
        out_shape=jax.ShapeDtypeStruct((B, 1), jnp.float32),
        grid=(nb, nn),
        in_specs=in_specs,
        out_specs=pl.BlockSpec((TB, 1), lambda i, k: (i, 0)),
        scratch_shapes=[pltpu.VMEM((TB, acc_lanes), jnp.float32)],
        compiler_params=pltpu.CompilerParams(
            dimension_semantics=("parallel", "arbitrary"),
            vmem_limit_bytes=32 * 1024 * 1024,
        ),
    )(*args)
    return out[:, 0]


def _reference(inputs, target, mask=None):
    x = inputs.astype(jnp.float32)
    y = target.astype(jnp.float32)
    loss = jnp.maximum(x, 0.0) - x * y + jnp.log1p(jnp.exp(-jnp.abs(x)))
    if mask is not None:
        loss = loss * mask.astype(jnp.float32)
    return jnp.mean(loss, axis=1)


if __name__ == "__main__":
    key = jax.random.PRNGKey(0)
    k1, k2, k3 = jax.random.split(key, 3)

    # Small shape (single tile): batch of 8 centers, 128 (pos+neg) samples per center.
    B, N = 8, 128
    logits = jax.random.normal(k1, (B, N), dtype=jnp.float32) * 2.0
    target = (jax.random.uniform(k2, (B, N)) > 0.5).astype(jnp.float32)
    mask = (jax.random.uniform(k3, (B, N)) > 0.2).astype(jnp.float32)

    out = jax.block_until_ready(sigmoid_loss(logits, target, mask))
    ref = _reference(logits, target, mask)
    assert out.shape == (B,)
    assert jnp.allclose(out, ref, atol=1e-5, rtol=1e-5)

    # No-mask path (2-input kernel variant, no ones-mask DMA).
    out2 = jax.block_until_ready(sigmoid_loss(logits, target))
    ref2 = _reference(logits, target)
    assert jnp.allclose(out2, ref2, atol=1e-5, rtol=1e-5)

    # Multi-tile path with a ragged last N tile (exercises accumulator + padding mask).
    B2, N2 = 16, 384
    k4, k5, k6 = jax.random.split(jax.random.PRNGKey(1), 3)
    logits2 = jax.random.normal(k4, (B2, N2), dtype=jnp.float32) * 2.0
    target2 = (jax.random.uniform(k5, (B2, N2)) > 0.5).astype(jnp.float32)
    mask2 = (jax.random.uniform(k6, (B2, N2)) > 0.2).astype(jnp.float32)
    out3 = jax.block_until_ready(sigmoid_loss(logits2, target2, mask2, tb=8, tn=256))
    ref3 = _reference(logits2, target2, mask2)
    assert jnp.allclose(out3, ref3, atol=1e-5, rtol=1e-5)

    # bf16 logits (halved HBM traffic), f32 math inside the kernel.
    out4 = jax.block_until_ready(
        sigmoid_loss(logits2.astype(jnp.bfloat16), target2, mask2, tb=8, tn=256))
    ref4 = _reference(logits2.astype(jnp.bfloat16).astype(jnp.float32), target2, mask2)
    assert jnp.allclose(out4, ref4, atol=1e-3, rtol=1e-3)

    print("KERNEL_OK")
</pallas_src>

<mosaic_0001>
module attributes {stable_mosaic.version = 11 : i64} {
  func.func @kernel(%arg0: i32, %arg1: i32, %arg2: memref<8x128xf32, #tpu.memory_space<vmem>>, %arg3: memref<8x128xf32, #tpu.memory_space<vmem>>, %arg4: memref<8x128xf32, #tpu.memory_space<vmem>>, %arg5: memref<8x1xf32, #tpu.memory_space<vmem>>, %arg6: memref<8x128xf32, #tpu.memory_space<vmem>>) attributes {dimension_semantics = [#tpu.dimension_semantics<parallel>, #tpu.dimension_semantics<arbitrary>], iteration_bounds = array<i64: 1, 1>, scalar_prefetch = 0 : i64, scratch_operands = 1 : i64, tpu.core_type = #tpu.core_type<tc>, window_params = [{transform_indices = @transform_0, window_bounds = array<i64: 8, 128>}, {transform_indices = @transform_1, window_bounds = array<i64: 8, 128>}, {transform_indices = @transform_2, window_bounds = array<i64: 8, 128>}, {transform_indices = @transform_3, window_bounds = array<i64: 8, 1>}]} {
    %c0_i32 = arith.constant 0 : i32
    %0 = arith.cmpi eq, %arg1, %c0_i32 : i32
    %1 = arith.extui %0 : i1 to i32
    %c0_i32_0 = arith.constant 0 : i32
    %2 = arith.cmpi ne, %1, %c0_i32_0 : i32
    scf.if %2 {
      %cst_13 = arith.constant 0.000000e+00 : f32
      %23 = vector.broadcast %cst_13 : f32 to vector<8x128xf32>
      %c0_14 = arith.constant 0 : index
      %c0_15 = arith.constant 0 : index
      %24 = vector.load %arg6[%c0_14, %c0_15] : memref<8x128xf32, #tpu.memory_space<vmem>>, vector<8x128xf32>
      tpu.vector_store %arg6[%c0_14, %c0_15], %23 {strides = array<i32>} : memref<8x128xf32, #tpu.memory_space<vmem>>, vector<8x128xf32>,
    } else {
    }
    %c0 = arith.constant 0 : index
    %c0_1 = arith.constant 0 : index
    %3 = vector.load %arg2[%c0, %c0_1] : memref<8x128xf32, #tpu.memory_space<vmem>>, vector<8x128xf32>
    %c0_2 = arith.constant 0 : index
    %c0_3 = arith.constant 0 : index
    %4 = vector.load %arg3[%c0_2, %c0_3] : memref<8x128xf32, #tpu.memory_space<vmem>>, vector<8x128xf32>
    %cst = arith.constant 0.000000e+00 : f32
    %5 = vector.broadcast %cst : f32 to vector<8x128xf32>
    %6 = arith.maximumf %3, %5 : vector<8x128xf32>
    %7 = arith.mulf %3, %4 : vector<8x128xf32>
    %8 = arith.subf %6, %7 : vector<8x128xf32>
    %9 = math.absf %3 : vector<8x128xf32>
    %cst_4 = arith.constant 0.000000e+00 : f32
    %10 = vector.broadcast %cst_4 : f32 to vector<8x128xf32>
    %11 = arith.subf %10, %9 : vector<8x128xf32>
    %12 = math.exp %11 : vector<8x128xf32>
    %13 = math.log1p %12 : vector<8x128xf32>
    %14 = arith.addf %8, %13 : vector<8x128xf32>
    %c0_5 = arith.constant 0 : index
    %c0_6 = arith.constant 0 : index
    %15 = vector.load %arg4[%c0_5, %c0_6] : memref<8x128xf32, #tpu.memory_space<vmem>>, vector<8x128xf32>
    %16 = arith.mulf %14, %15 : vector<8x128xf32>
    %c0_7 = arith.constant 0 : index
    %c0_8 = arith.constant 0 : index
    %17 = vector.load %arg6[%c0_7, %c0_8] : memref<8x128xf32, #tpu.memory_space<vmem>>, vector<8x128xf32>
    %18 = arith.addf %17, %16 : vector<8x128xf32>
    %c0_9 = arith.constant 0 : index
    %c0_10 = arith.constant 0 : index
    %19 = vector.load %arg6[%c0_9, %c0_10] : memref<8x128xf32, #tpu.memory_space<vmem>>, vector<8x128xf32>
    tpu.vector_store %arg6[%c0_9, %c0_10], %18 {strides = array<i32>} : memref<8x128xf32, #tpu.memory_space<vmem>>, vector<8x128xf32>,
    %c0_i32_11 = arith.constant 0 : i32
    %20 = arith.cmpi eq, %arg1, %c0_i32_11 : i32
    %21 = arith.extui %20 : i1 to i32
    %c0_i32_12 = arith.constant 0 : i32
    %22 = arith.cmpi ne, %21, %c0_i32_12 : i32
    scf.if %22 {
      %c0_13 = arith.constant 0 : index
      %c0_14 = arith.constant 0 : index
      %23 = vector.load %arg6[%c0_13, %c0_14] : memref<8x128xf32, #tpu.memory_space<vmem>>, vector<8x128xf32>
      %cst_15 = arith.constant dense<0.000000e+00> : vector<8xf32>
      %24 = vector.multi_reduction <add>, %23, %cst_15 [1] : vector<8x128xf32> to vector<8xf32>
      %25 = vector.shape_cast %24 : vector<8xf32> to vector<8x1xf32>
      %cst_16 = arith.constant 7.812500e-03 : f32
      %26 = vector.broadcast %cst_16 : f32 to vector<8x1xf32>
      %27 = arith.mulf %25, %26 : vector<8x1xf32>
      %c0_17 = arith.constant 0 : index
      %c0_18 = arith.constant 0 : index
      %28 = vector.load %arg5[%c0_17, %c0_18] : memref<8x1xf32, #tpu.memory_space<vmem>>, vector<8x1xf32>
      tpu.vector_store %arg5[%c0_17, %c0_18], %27 {strides = array<i32>} : memref<8x1xf32, #tpu.memory_space<vmem>>, vector<8x1xf32>,
    } else {
    }
    return
  }
  func.func @transform_0(%arg0: i32, %arg1: i32) -> (i32, i32) {
    %c0_i32 = arith.constant 0 : i32
    return %arg0, %arg1 : i32, i32
  }
  func.func @transform_1(%arg0: i32, %arg1: i32) -> (i32, i32) {
    %c0_i32 = arith.constant 0 : i32
    return %arg0, %arg1 : i32, i32
  }
  func.func @transform_2(%arg0: i32, %arg1: i32) -> (i32, i32) {
    %c0_i32 = arith.constant 0 : i32
    return %arg0, %arg1 : i32, i32
  }
  func.func @transform_3(%arg0: i32, %arg1: i32) -> (i32, i32) {
    %c0_i32 = arith.constant 0 : i32
    %c0_i32_0 = arith.constant 0 : i32
    return %arg0, %c0_i32 : i32, i32
  }
}

</mosaic_0001>

<bundles_post_ra>
// kernel: tpu_custom_call.1
= control target key start
LH: loop header
LB: loop body
LE: loop exit
PB: predicated region body
PF: predicated region fallthrough
CT: control target
= control target key end

     0   :  { %8 = vsyncpa [#allocation4], 0  ;;  %s217_s0 = inlined_call_operand.hbm [shape: f32[8,128], index: 0, kind: input, shape index: {}]   ;;  %s218_s1 = inlined_call_operand.hbm [shape: f32[8,128], index: 1, kind: input, shape index: {}]   ;;  %s219_s2 = inlined_call_operand.hbm [shape: f32[8,128], index: 2, kind: input, shape index: {}]   ;;  %s220_s3 = inlined_call_operand.vmem [shape: f32[8,1], index: 3, kind: output, shape index: {}]  }
   0x1   :  { %9 = vsyncpa [#allocation6], 0  ;;  %s26_s14 = sshll.u32 %s218_s1, 4  ;;  %s182_s15 = smov [#allocation5]   ;;  %s27_s14 = int_to_ptr.hbm [resolvable:$true] %s26_s14 }
   0x2   :  { %s28_s16 = sshll.u32 %s182_s15, 4  ;;  %s15_s19 = sshll.u32 %s217_s0, 4  ;;  %s29_s16 = int_to_ptr.vmem [resolvable:$true] %s28_s16  ;;  %s16_s19 = int_to_ptr.hbm [resolvable:$true] %s15_s19 }
   0x3   :  { %31 = dma.hbm_to_vmem [thread:$0]  %s27_s14, 128, %s29_s16, [#allocation6]  }
   0x4   :  { %s183_s20 = smov [#allocation3]   ;;  %s37_s24 = sshll.u32 %s219_s2, 4  ;;  %s38_s24 = int_to_ptr.hbm [resolvable:$true] %s37_s24 }
   0x5   :  { %s17_s21 = sshll.u32 %s183_s20, 4  ;;  %s184_s1 = smov [#allocation7]   ;;  %s18_s21 = int_to_ptr.vmem [resolvable:$true] %s17_s21 }
   0x6   :  { %20 = dma.hbm_to_vmem [thread:$0]  %s16_s19, 128, %s18_s21, [#allocation4]  }
   0x7   :  { %s39_s25 = sshll.u32 %s184_s1, 4  ;;  %s40_s25 = int_to_ptr.vmem [resolvable:$true] %s39_s25 }
   0x8   :  { %42 = dma.hbm_to_vmem [thread:$0]  %s38_s24, 128, %s40_s25, [#allocation6]  }
   0x9   :  { %178 = dma.done.wait [#allocation4], 128  }
   0xa   :  { %179 = vsyncadd [#allocation4], 4294967168 }
   0xb   :  { %180 = dma.done.wait [#allocation6], 256  }
   0xc   :  { %181 = vsyncadd [#allocation6], 4294967040  ;;  %v60_v0 = vld [vmem:[#allocation3] sm:$0xff]  ;;  %v61_v7 = vld [vmem:[#allocation5] sm:$0xff]  ;;  %vm91_vm1 = vcmask 7168  }
   0xd   :  { %v65_v1 = vand.u32 2147483647, %v60_v0  ;;  %v62_v9 = vmax.f32 %v60_v0, 0.0  ;;  %v63_v10 = vmul.f32 %v61_v7, %v60_v0  ;;  %v79_v17 = vld [vmem:[#allocation7] sm:$0xff] }
   0xf   :  { %v66_v2 = vsub.f32 0.0, %v65_v1  ;;  %v64_v14 = vsub.f32 %v62_v9, %v63_v10 }
  0x11   :  { %v67_v3 = vmul.f32 1.442695, %v66_v2 }
  0x13   :  { %102 = vpow2.f32 %v67_v3 }
  0x19   :  { %v103_v4 = vpop.eup %102 }
  0x1a   :  { %v69_v5 = vadd.f32 1.0, %v103_v4  ;;  %v72_v6 = vmul.f32 -0.5, %v103_v4  ;;  %v75_v11 = vand.u32 2147483647, %v103_v4 }
  0x1c   :  { %104 = vlog2.f32 %v69_v5  ;;  %v73_v8 = vadd.f32 1.0, %v72_v6  ;;  %vm76_vm0 = vcmp.lt.f32.partialorder %v75_v11, 0.0004427343 }
  0x1e   :  { %v74_v12 = vmul.f32 %v103_v4, %v73_v8 }
  0x22   :  { %v105_v13 = vpop.eup %104 }
  0x23   :  { %v71_v15 = vmul.f32 0.6931472, %v105_v13 }
  0x25   :  { %v77_v16 = vsel %vm76_vm0, %v74_v12, %v71_v15 }
  0x26   :  { %v78_v18 = vadd.f32 %v77_v16, %v64_v14 }
  0x28   :  { %v80_v19 = vmul.f32 %v79_v17, %v78_v18 }
  0x2a   :  { %88 = vadd.xlane.f32.xlu0 %v80_v19 }
  0x9d   :  { %v89_v20 = vpop.xlane.xlu0 %88 }
  0x9e   :  { %v90_v21 = vmul.f32 0.0078125, %v89_v20 }
  0xa0   :  { %92 = vst.msk [vmem:[%s220_s3] sm:$0xff] %vm91_vm1, %v90_v21 }
  0xa1   :  { %97 = vsyncpa [#allocation4], 1 }
  0xa2   :  { %98 = vsyncpa [#allocation6], 1 }

</bundles_post_ra>
